<compile_context>
chip_gen: v7x
topology: tpu7x:2x2x1
jax: 0.10.0
libtpu: 0.0.40
codegen_flags: <defaults>
</compile_context>

<pallas_src>
import functools

import jax
import jax.numpy as jnp
from jax.experimental import pallas as pl
from jax.experimental.pallas import tpu as pltpu


# --------------------------------------------------------------------------
# Kernel: one (block_nc, H*W) lane-dense tile -> one scalar partial sum.
# --------------------------------------------------------------------------
def _style_loss_kernel(p_ref, c_ref, m_ref, out_ref, *, w, inv_mse):
    p = p_ref[...].astype(jnp.float32)          # (rows, H*W)
    c = c_ref[...].astype(jnp.float32)

    # Pre-scaled lane masks computed once in the wrapper:
    #   m_ref[0] = [j >= w]      * reg / (nc * (h-1) * w)   (vertical TV)
    #   m_ref[1] = [j % w != 0]  * reg / (nc * h * (w-1))   (horizontal TV)
    mh = m_ref[0:1, :]                          # (1, H*W) f32
    mw = m_ref[1:2, :]

    diff = p - c

    # Neighbour one image row above / one pixel to the left via XLU rolls
    # (jnp.roll convention: rolled[j] == p[j - shift], wrap masked out by m*).
    p_up = pltpu.roll(p, w, 1)
    p_lf = pltpu.roll(p, 1, 1)
    dh = p_up - p
    dw = p_lf - p

    # One fused cross-lane reduction; all divisors / reg already folded in.
    combined = diff * diff * inv_mse + dh * dh * mh + dw * dw * mw
    out_ref[0, 0] = jnp.sum(combined)


# --------------------------------------------------------------------------
# Generation-aware budgets
# --------------------------------------------------------------------------
def _vmem_capacity_bytes():
    try:
        info = pltpu.get_tpu_info()
        cap = getattr(info, "vmem_capacity_bytes", None)
        if cap:
            return int(cap)
    except Exception:
        pass
    return 64 * 1024 * 1024                     # conservative default (v7x)


def _budgets():
    """Returns (per-input tile budget bytes, vmem_limit_bytes)."""
    cap = _vmem_capacity_bytes()
    if cap >= 100 * 1024 * 1024:                # v5e / v6e: 128 MiB physical
        return 8 * 1024 * 1024, 96 * 1024 * 1024
    return 4 * 1024 * 1024, 44 * 1024 * 1024    # v7x: 64 MiB physical


def _choose_block_nc(nc, hw, itemsize, tile_budget_bytes):
    """Pick (block_nc, padded_nc) for the N*C row-block grid axis."""
    # Sublane packing granularity: 8 rows f32, 16 bf16, 32 int8/fp8.
    pack = max(8, 32 // max(int(itemsize), 1))
    per_row = hw * 4                            # f32-equivalent (kernel upcasts)
    if nc * per_row <= tile_budget_bytes:
        return nc, nc                           # single full-array block
    rows = (tile_budget_bytes // per_row) // pack * pack
    rows = max(rows, pack)
    # TODO(synk): if `pack` rows still exceed VMEM (huge H*W), tile H*W too.
    nc_pad = ((nc + rows - 1) // rows) * rows
    return rows, nc_pad


# --------------------------------------------------------------------------
# Wrapper
# --------------------------------------------------------------------------
def style_generation_loss(predicted_image, content_image, regularization,
                          *, tile_budget_bytes=None):
    """predicted_image, content_image: (N, C, H, W) arrays. Returns scalar f32."""
    assert predicted_image.shape == content_image.shape
    n, c, h, w = predicted_image.shape
    assert h >= 2 and w >= 2, "TV term needs H >= 2 and W >= 2"
    nc, hw = n * c, h * w

    # Lane-dense 2D view: each (image, channel) row carries its flattened
    # H*W pixels along the 128-lane axis.
    pred2d = predicted_image.reshape(nc, hw)
    cont2d = content_image.reshape(nc, hw)

    # Static (shape-only) MSE divisor baked into the kernel.
    inv_mse = 1.0 / float(nc * h * w)

    # Lane masks for the TV terms, pre-scaled by regularization and the true
    # element counts (runtime jnp math -> no recompile per reg value).
    reg = jnp.asarray(regularization, dtype=jnp.float32)
    idx = jnp.arange(hw, dtype=jnp.int32)
    mask_h = (idx >= w).astype(jnp.float32) * (reg / float(nc * (h - 1) * w))
    mask_w = ((idx % w) != 0).astype(jnp.float32) * (reg / float(nc * h * (w - 1)))
    scaled_masks = jnp.stack([mask_h, mask_w], axis=0)          # (2, H*W) f32

    auto_budget, vmem_limit = _budgets()
    if tile_budget_bytes is None:
        tile_budget_bytes = auto_budget

    block_nc, nc_pad = _choose_block_nc(
        nc, hw, predicted_image.dtype.itemsize, tile_budget_bytes)
    if nc_pad != nc:
        # Zero rows contribute exactly 0 to every term (divisors use true nc).
        pad = ((0, nc_pad - nc), (0, 0))
        pred2d = jnp.pad(pred2d, pad)
        cont2d = jnp.pad(cont2d, pad)
    num_blocks = nc_pad // block_nc

    kernel = functools.partial(_style_loss_kernel, w=w, inv_mse=inv_mse)

    partials = pl.pallas_call(
        kernel,
        out_shape=jax.ShapeDtypeStruct((num_blocks, 1), jnp.float32),
        grid=(num_blocks,),
        in_specs=[
            pl.BlockSpec((block_nc, hw), lambda i: (i, 0)),     # predicted
            pl.BlockSpec((block_nc, hw), lambda i: (i, 0)),     # content
            pl.BlockSpec((2, hw), lambda i: (0, 0)),            # scaled masks
        ],
        out_specs=pl.BlockSpec((1, 1), lambda i: (i, 0),
                               memory_space=pltpu.SMEM),
        compiler_params=pltpu.CompilerParams(
            dimension_semantics=("parallel",),
            vmem_limit_bytes=vmem_limit,
        ),
    )(pred2d, cont2d, scaled_masks)

    return jnp.sum(partials)


# --------------------------------------------------------------------------
# Pure-JAX reference (slicing formulation of the same loss)
# --------------------------------------------------------------------------
def _reference_loss(p, c, regularization):
    p = p.astype(jnp.float32)
    c = c.astype(jnp.float32)
    content = jnp.mean((p - c) ** 2)
    dh = p[:, :, 1:, :] - p[:, :, :-1, :]
    dw = p[:, :, :, 1:] - p[:, :, :, :-1]
    tv = jnp.mean(dh * dh) + jnp.mean(dw * dw)
    return content + regularization * tv


if __name__ == "__main__":
    key = jax.random.PRNGKey(0)
    k1, k2, k3, k4, k5, k6 = jax.random.split(key, 6)

    regularization = 0.25

    # 1) Small shapes consistent with the module's image inputs (NCHW):
    #    single full-array block, grid of 1.
    N, C, H, W = 2, 4, 16, 16
    predicted_image = jax.random.normal(k1, (N, C, H, W), dtype=jnp.float32)
    content_image = jax.random.normal(k2, (N, C, H, W), dtype=jnp.float32)

    loss = style_generation_loss(predicted_image, content_image, regularization)
    loss = jax.block_until_ready(loss)
    ref = _reference_loss(predicted_image, content_image, regularization)
    assert jnp.allclose(loss, ref, atol=1e-4, rtol=1e-4), (loss, ref)

    # 2) Tiled parallel-partials path (forced small tile budget): 3 row-blocks.
    N2, C2, H2, W2 = 4, 6, 32, 64
    pred2 = jax.random.normal(k3, (N2, C2, H2, W2), dtype=jnp.float32)
    cont2 = jax.random.normal(k4, (N2, C2, H2, W2), dtype=jnp.float32)
    loss2 = style_generation_loss(pred2, cont2, regularization,
                                  tile_budget_bytes=64 * 1024)
    loss2 = jax.block_until_ready(loss2)
    ref2 = _reference_loss(pred2, cont2, regularization)
    assert jnp.allclose(loss2, ref2, atol=1e-4, rtol=1e-4), (loss2, ref2)

    # 3) bf16 inputs + non-aligned N*C (15) -> zero-padded to the bf16 pack.
    N3, C3, H3, W3 = 3, 5, 32, 64
    pred3 = jax.random.normal(k5, (N3, C3, H3, W3), dtype=jnp.bfloat16)
    cont3 = jax.random.normal(k6, (N3, C3, H3, W3), dtype=jnp.bfloat16)
    loss3 = style_generation_loss(pred3, cont3, regularization,
                                  tile_budget_bytes=64 * 1024)
    loss3 = jax.block_until_ready(loss3)
    ref3 = _reference_loss(pred3, cont3, regularization)
    assert jnp.allclose(loss3, ref3, atol=1e-4, rtol=1e-4), (loss3, ref3)

    print("KERNEL_OK")
</pallas_src>

<mosaic_0001>
module attributes {stable_mosaic.version = 11 : i64} {
  func.func @_style_loss_kernel(%arg0: i32, %arg1: memref<8x256xf32, #tpu.memory_space<vmem>>, %arg2: memref<8x256xf32, #tpu.memory_space<vmem>>, %arg3: memref<2x256xf32, #tpu.memory_space<vmem>>, %arg4: memref<1x1xf32, #tpu.memory_space<smem>>) attributes {dimension_semantics = [#tpu.dimension_semantics<parallel>], iteration_bounds = array<i64: 1>, scalar_prefetch = 0 : i64, scratch_operands = 0 : i64, tpu.core_type = #tpu.core_type<tc>, window_params = [{transform_indices = @transform_0, window_bounds = array<i64: 8, 256>}, {transform_indices = @transform_1, window_bounds = array<i64: 8, 256>}, {pipeline_mode = #tpu.pipeline_mode<synchronous>, transform_indices = @transform_2, window_bounds = array<i64: 2, 256>}, {transform_indices = @transform_3, window_bounds = array<i64: 1, 1>}]} {
    %c0 = arith.constant 0 : index
    %c0_0 = arith.constant 0 : index
    %0 = vector.load %arg1[%c0, %c0_0] : memref<8x256xf32, #tpu.memory_space<vmem>>, vector<8x256xf32>
    %c0_1 = arith.constant 0 : index
    %c0_2 = arith.constant 0 : index
    %1 = vector.load %arg2[%c0_1, %c0_2] : memref<8x256xf32, #tpu.memory_space<vmem>>, vector<8x256xf32>
    %c0_3 = arith.constant 0 : index
    %c0_4 = arith.constant 0 : index
    %2 = vector.load %arg3[%c0_3, %c0_4] : memref<2x256xf32, #tpu.memory_space<vmem>>, vector<1x256xf32>
    %c1 = arith.constant 1 : index
    %c0_5 = arith.constant 0 : index
    %3 = vector.load %arg3[%c1, %c0_5] : memref<2x256xf32, #tpu.memory_space<vmem>>, vector<1x256xf32>
    %4 = arith.subf %0, %1 : vector<8x256xf32>
    %c16_i32 = arith.constant 16 : i32
    %5 = tpu.dynamic_rotate %0 by %c16_i32 dim 1 : vector<8x256xf32>, i32 -> vector<8x256xf32>
    %c1_i32 = arith.constant 1 : i32
    %6 = tpu.dynamic_rotate %0 by %c1_i32 dim 1 : vector<8x256xf32>, i32 -> vector<8x256xf32>
    %7 = arith.subf %5, %0 : vector<8x256xf32>
    %8 = arith.subf %6, %0 : vector<8x256xf32>
    %9 = arith.mulf %4, %4 : vector<8x256xf32>
    %cst = arith.constant 4.8828125E-4 : f32
    %10 = vector.broadcast %cst : f32 to vector<8x256xf32>
    %11 = arith.mulf %9, %10 : vector<8x256xf32>
    %12 = arith.mulf %7, %7 : vector<8x256xf32>
    %13 = vector.broadcast %2 : vector<1x256xf32> to vector<8x256xf32>
    %14 = arith.mulf %12, %13 : vector<8x256xf32>
    %15 = arith.addf %11, %14 : vector<8x256xf32>
    %16 = arith.mulf %8, %8 : vector<8x256xf32>
    %17 = vector.broadcast %3 : vector<1x256xf32> to vector<8x256xf32>
    %18 = arith.mulf %16, %17 : vector<8x256xf32>
    %19 = arith.addf %15, %18 : vector<8x256xf32>
    %20 = vector.shape_cast %19 : vector<8x256xf32> to vector<1x8x256xf32>
    %cst_6 = arith.constant dense<0.000000e+00> : vector<1xf32>
    %21 = vector.multi_reduction <add>, %20, %cst_6 [1, 2] : vector<1x8x256xf32> to vector<1xf32>
    %22 = vector.shape_cast %21 : vector<1xf32> to vector<1x1x1xf32>
    %23 = vector.extract %22[0, 0, 0] : f32 from vector<1x1x1xf32>
    %c0_7 = arith.constant 0 : index
    %c0_8 = arith.constant 0 : index
    %24 = memref.load %arg4[%c0_7, %c0_8] : memref<1x1xf32, #tpu.memory_space<smem>>
    memref.store %23, %arg4[%c0_7, %c0_8] : memref<1x1xf32, #tpu.memory_space<smem>>
    return
  }
  func.func @transform_0(%arg0: i32) -> (i32, i32) {
    %c0_i32 = arith.constant 0 : i32
    %c0_i32_0 = arith.constant 0 : i32
    return %arg0, %c0_i32 : i32, i32
  }
  func.func @transform_1(%arg0: i32) -> (i32, i32) {
    %c0_i32 = arith.constant 0 : i32
    %c0_i32_0 = arith.constant 0 : i32
    return %arg0, %c0_i32 : i32, i32
  }
  func.func @transform_2(%arg0: i32) -> (i32, i32) {
    %c0_i32 = arith.constant 0 : i32
    %c0_i32_0 = arith.constant 0 : i32
    %c0_i32_1 = arith.constant 0 : i32
    return %c0_i32, %c0_i32_0 : i32, i32
  }
  func.func @transform_3(%arg0: i32) -> (i32, i32) {
    %c0_i32 = arith.constant 0 : i32
    %c0_i32_0 = arith.constant 0 : i32
    return %arg0, %c0_i32 : i32, i32
  }
}

</mosaic_0001>

<bundles_post_ra>
// kernel: tpu_custom_call.1
= control target key start
LH: loop header
LB: loop body
LE: loop exit
PB: predicated region body
PF: predicated region fallthrough
CT: control target
= control target key end

     0   :  { %8 = vsyncpa [#allocation3], 0  ;;  %s268_s0 = inlined_call_operand.hbm [shape: f32[8,256], index: 0, kind: input, shape index: {}]   ;;  %s269_s1 = inlined_call_operand.hbm [shape: f32[8,256], index: 1, kind: input, shape index: {}]   ;;  %s270_s2 = inlined_call_operand.vmem [shape: f32[2,256], index: 2, kind: input, shape index: {}]   ;;  %s271_s3 = inlined_call_operand.hbm [shape: f32[1,1], index: 3, kind: output, shape index: {}]  }
   0x1   :  { %9 = vsyncpa [#allocation6], 0 }
   0x2   :  { %10 = vsyncpa [#allocation4], 0  ;;  %s201_s12 = smov [#allocation2]   ;;  %s202_s14 = smov [#allocation5]  }
   0x3   :  { %s17_s13 = sshll.u32 %s201_s12, 4  ;;  %s27_s15 = sshll.u32 %s202_s14, 4  ;;  %s18_s13 = int_to_ptr.vmem [resolvable:$true] %s17_s13  ;;  %s28_s15 = int_to_ptr.vmem [resolvable:$true] %s27_s15 }
   0x4   :  { %s141_s18 = scalar_lea.hbm %s268_s0, 256 }
   0x5   :  { %p142_p0 = scmp.ne.s32.totalorder %s268_s0, %s141_s18  ;;  %p145_p1 = scmp.lt.u32.totalorder %s141_s18, %s268_s0 }
   0x7   :  { %p147_p2 = pnand %p145_p1, %p142_p0 }
   0x9   :  { %150 = shalt.err (!%p147_p2)
}
   0xa   :  { %s151_s23 = scalar_lea.vmem %s18_s13, 256  ;;  %p156_p4 = scmp.lt.s32.totalorder %s18_s13, %s18_s13 }
   0xb   :  { %p152_p3 = scmp.ne.s32.totalorder %s18_s13, %s151_s23  ;;  %p157_p5 = scmp.lt.s32.totalorder %s151_s23, %s151_s23 }
   0xd   :  { %p158_p6 = por %p157_p5, %p156_p4 }
   0xf   :  { %p159_p7 = pnand %p158_p6, %p152_p3 }
  0x11   :  { %162 = shalt.err (!%p159_p7)
}
  0x12   :  { %20 = dma.hbm_to_vmem [thread:$0]  %s268_s0, 256, %s18_s13, [#allocation3]  }
  0x13   :  { %s163_s28 = scalar_lea.hbm %s269_s1, 256 }
  0x14   :  { %p164_p8 = scmp.ne.s32.totalorder %s269_s1, %s163_s28  ;;  %p167_p9 = scmp.lt.u32.totalorder %s163_s28, %s269_s1 }
  0x16   :  { %p169_p10 = pnand %p167_p9, %p164_p8 }
  0x18   :  { %172 = shalt.err (!%p169_p10)
}
  0x19   :  { %s173_s6 = scalar_lea.vmem %s28_s15, 256  ;;  %p178_p12 = scmp.lt.s32.totalorder %s28_s15, %s28_s15 }
  0x1a   :  { %p174_p11 = scmp.ne.s32.totalorder %s28_s15, %s173_s6  ;;  %p179_p13 = scmp.lt.s32.totalorder %s173_s6, %s173_s6 }
  0x1c   :  { %p180_p0 = por %p179_p13, %p178_p12 }
  0x1e   :  { %p181_p1 = pnand %p180_p0, %p174_p11 }
  0x20   :  { %184 = shalt.err (!%p181_p1)
}
  0x21   :  { %30 = dma.hbm_to_vmem [thread:$0]  %s269_s1, 256, %s28_s15, [#allocation6]  }
  0x22   :  { %195 = dma.done.wait [#allocation3], 256  }
  0x23   :  { %196 = vsyncadd [#allocation3], 4294967040 }
  0x24   :  { %197 = dma.done.wait [#allocation6], 256  }
  0x25   :  { %198 = vsyncadd [#allocation6], 4294967040  ;;  %v39_v0 = vld [vmem:[#allocation2] sm:$0xff]  ;;  %s203_s8 = smov 1   ;;  %s204_s9 = smov 16   ;;  %v40_v1 = vld [vmem:[#allocation2 + $0x8] sm:$0xff]  ;;  %v52_v2 = vlaneseq }
  0x26   :  { %57 = vrot.lane.b32.xlu1 %v39_v0, %s203_s8  ;;  %48 = vrot.lane.b32.xlu0 %v39_v0, %s204_s9  ;;  %v41_v4 = vld [vmem:[#allocation5] sm:$0xff]  ;;  %v42_v5 = vld [vmem:[#allocation5 + $0x8] sm:$0xff]  ;;  %v43_v13 = vld [vmem:[%s270_s2] ss:$2 sm:$0x3]  ;;  %s185_s15 = scalar_lea.hbm %s271_s3, 16 }
  0x27   :  { %v76_v3 = vshrl.u32 %v52_v2, 7  ;;  %v53_v6 = vand.u32 127, %v52_v2  ;;  %v46_v7 = vsub.f32 %v39_v0, %v41_v4  ;;  %v47_v8 = vsub.f32 %v40_v1, %v42_v5  ;;  %v133_v16 = vld [vmem:[%s270_s2 + $0x1] ss:$2 sm:$0x3]  ;;  %p186_p2 = scmp.ne.s32.totalorder %s271_s3, %s185_s15  ;;  %p189_p3 = scmp.lt.u32.totalorder %s185_s15, %s271_s3 }
  0x29   :  { %v77_v11 = vsub.s32 0, %v76_v3  ;;  %v81_v12 = vsub.s32 1, %v76_v3  ;;  %vm61_vm0 = vcmp.lt.s32.totalorder %v53_v6, 1  ;;  %vm54_vm1 = vcmp.lt.s32.totalorder %v53_v6, 16  ;;  %p191_p4 = pnand %p189_p3, %p186_p2 }
  0x2a   :  { %59 = vrot.lane.b32.xlu1 %v40_v1, %s203_s8  ;;  %50 = vrot.lane.b32.xlu0 %v40_v1, %s204_s9  ;;  %v68_v14 = vmul.f32 %v46_v7, %v46_v7  ;;  %v69_v15 = vmul.f32 %v47_v8, %v47_v8 }
  0x2b   :  { %v78_v18 = vrot.slane %v43_v13, %v77_v11  ;;  %v82_v19 = vrot.slane %v43_v13, %v81_v12  ;;  %v95_v29 = vrot.slane %v133_v16, %v77_v11  ;;  %v99_v30 = vrot.slane %v133_v16, %v81_v12 }
  0x2c   :  { %v70_v31 = vmul.f32 0.00048828125, %v68_v14  ;;  %v71_v32 = vmul.f32 0.00048828125, %v69_v15 }
  0x98   :  { %v58_v9 = vpop.permute.xlu1 %57  ;;  %v49_v10 = vpop.permute.xlu0 %48 }
  0x9c   :  { %v60_v17 = vpop.permute.xlu1 %59  ;;  %v51_v20 = vpop.permute.xlu0 %50 }
  0x9d   :  { %v62_v21 = vsel %vm61_vm0, %v58_v9, %v60_v17  ;;  %v63_v22 = vsel %vm61_vm0, %v60_v17, %v58_v9  ;;  %v55_v23 = vsel %vm54_vm1, %v49_v10, %v51_v20  ;;  %v56_v24 = vsel %vm54_vm1, %v51_v20, %v49_v10 }
  0x9e   :  { %v66_v25 = vsub.f32 %v63_v22, %v39_v0  ;;  %v67_v26 = vsub.f32 %v62_v21, %v40_v1  ;;  %v64_v27 = vsub.f32 %v56_v24, %v39_v0  ;;  %v65_v28 = vsub.f32 %v55_v23, %v40_v1 }
  0xa0   :  { %v89_v33 = vmul.f32 %v66_v25, %v66_v25  ;;  %v90_v34 = vmul.f32 %v67_v26, %v67_v26  ;;  %v72_v35 = vmul.f32 %v64_v27, %v64_v27  ;;  %v73_v36 = vmul.f32 %v65_v28, %v65_v28 }
  0xa2   :  { %v85_v37 = vmul.f32 %v78_v18, %v72_v35  ;;  %v86_v38 = vmul.f32 %v82_v19, %v73_v36  ;;  %v102_v39 = vmul.f32 %v95_v29, %v89_v33  ;;  %v103_v40 = vmul.f32 %v99_v30, %v90_v34 }
  0xa4   :  { %v87_v41 = vadd.f32 %v85_v37, %v70_v31  ;;  %v88_v42 = vadd.f32 %v86_v38, %v71_v32 }
  0xa6   :  { %v104_v43 = vadd.f32 %v102_v39, %v87_v41  ;;  %v105_v44 = vadd.f32 %v103_v40, %v88_v42 }
  0xa8   :  { %v106_v45 = vadd.f32 %v105_v44, %v104_v43 }
  0xaa   :  { %107 = vadd.xlane.f32.xlu0 %v106_v45 }
 0x137   :  { %v108_v46 = vpop.xlane.xlu0 %107 }
 0x138   :  { %v109_v47 = vrot.slane %v108_v46, 4 }
 0x13a   :  { %v110_v48 = vadd.f32 %v109_v47, %v108_v46 }
 0x13c   :  { %v111_v49 = vrot.slane %v110_v48, 2 }
 0x13e   :  { %v112_v50 = vadd.f32 %v111_v49, %v110_v48 }
 0x140   :  { %v113_v51 = vrot.slane %v112_v50, 1 }
 0x142   :  { %v114_v52 = vadd.f32 %v113_v51, %v112_v50 }
 0x144   :  { %134 = vpush %v114_v52 }
 0x175   :  { %s135_s2 = spop %134 }
 0x176   :  { %117 = sst [smem:[#allocation7]] %s135_s2 }
 0x177   :  { %194 = shalt.err (!%p191_p4)
}
 0x178   :  { %s205_s20 = smov [#allocation7]  }
 0x179   :  { %125 = dma.smem_to_hbm %s205_s20, 16, %s271_s3, [#allocation4]  }
 0x17a   :  { %199 = dma.done.wait [#allocation4], 16  }
 0x17b   :  { %200 = vsyncadd [#allocation4], 4294967280 }
 0x17c   :  { %129 = sfence }
 0x17d   :  { %130 = vsyncpa [#allocation3], 1 }
 0x17e   :  { %131 = vsyncpa [#allocation6], 1 }
 0x17f   :  { %132 = vsyncpa [#allocation4], 1 }

</bundles_post_ra>
